<compile_context>
chip_gen: v6e
topology: v6e:2x2x1
jax: 0.10.0
libtpu: 0.0.40
codegen_flags: <defaults>
</compile_context>

<pallas_src>
import jax
import jax.numpy as jnp
from jax.experimental import pallas as pl
from jax.experimental.pallas import tpu as pltpu


def _round_up(a, m):
    return (a + m - 1) // m * m


def _epilogue(y_f32, out_dtype):
    # F.normalize(y, dim=-1, p=2): y / max(||y||, 1e-12)
    #   == y * rsqrt(max(sum(y*y), 1e-24))   (sqrt is monotone -> exact)
    sumsq = jnp.sum(y_f32 * y_f32, axis=-1, keepdims=True)
    inv = jax.lax.rsqrt(jnp.maximum(sumsq, 1e-24))
    return jnp.tanh(y_f32 * inv).astype(out_dtype)


def _kernel_resident(x_ref, w_ref, b_ref, o_ref):
    # x_ref: (tm, Kp)  w_ref: (Kp, Np)  b_ref: (1, Np)  o_ref: (tm, Np)
    y = jnp.dot(x_ref[...], w_ref[...], preferred_element_type=jnp.float32)
    y = y + b_ref[...].astype(jnp.float32)
    o_ref[...] = _epilogue(y, o_ref.dtype)


def _kernel_ksplit(x_ref, w_ref, b_ref, o_ref, acc_ref):
    # x_ref: (tm, tk)  w_ref: (tk, Np)  b_ref: (1, Np)
    # o_ref: (tm, Np)  acc_ref: (tm, Np) f32 accumulator
    k = pl.program_id(1)

    @pl.when(k == 0)
    def _():
        acc_ref[...] = jnp.zeros_like(acc_ref)

    acc_ref[...] += jnp.dot(
        x_ref[...], w_ref[...], preferred_element_type=jnp.float32
    )

    @pl.when(k == pl.num_programs(1) - 1)
    def _():
        y = acc_ref[...] + b_ref[...].astype(jnp.float32)
        o_ref[...] = _epilogue(y, o_ref.dtype)


def mlp_layer(features, weight, bias, *, tm=256, tk=512,
              k_split_threshold_bytes=16 << 20, force_k_split=False):
    """features: [..., input_dim]; weight: (output_dim, input_dim) torch layout;
    bias: (output_dim,). Returns [..., output_dim]."""
    input_dim = features.shape[-1]
    output_dim = weight.shape[0]
    lead_shape = features.shape[:-1]
    out_dtype = features.dtype

    x = features.reshape(-1, input_dim)
    M = x.shape[0]

    # Lane-dense feature dims (multiples of 128).
    Kp = _round_up(input_dim, 128)
    Np = _round_up(output_dim, 128)

    # Row tile: multiple of 16 (covers f32 sublane=8 and bf16 sublane=16).
    tm_eff = max(16, min(tm, _round_up(M, 16)))
    # Prefer >=2 grid steps so the parallel row axis can shard across cores.
    if _round_up(M, tm_eff) // tm_eff < 2 and M >= 32:
        tm_eff = _round_up(-(-M // 2), 16)
    tm = tm_eff
    Mp = _round_up(M, tm)

    w_item = jnp.dtype(weight.dtype).itemsize
    b_item = jnp.dtype(bias.dtype).itemsize
    resident_bytes = Kp * Np * w_item + Np * b_item
    use_k_split = force_k_split or resident_bytes > k_split_threshold_bytes

    if use_k_split:
        tk = _round_up(max(128, min(tk, Kp)), 128)
        Kp = _round_up(input_dim, tk)
        kt = Kp // tk
    else:
        tk = Kp
        kt = 1

    x_p = x
    if Mp != M or Kp != input_dim:
        x_p = jnp.pad(x, ((0, Mp - M), (0, Kp - input_dim)))
    w_p = jnp.pad(weight.T, ((0, Kp - input_dim), (0, Np - output_dim)))
    b_p = jnp.pad(bias, (0, Np - output_dim)).reshape(1, Np)

    x_item = jnp.dtype(x_p.dtype).itemsize
    o_item = jnp.dtype(out_dtype).itemsize
    if use_k_split:
        footprint = (2 * tm * tk * x_item + 2 * tk * Np * w_item + Np * b_item
                     + 2 * tm * Np * o_item + tm * Np * 4)
    else:
        footprint = (Kp * Np * w_item + Np * b_item
                     + 2 * tm * Kp * x_item + 2 * tm * Np * o_item)
    vmem_limit = int(min(max(2 * footprint, 8 << 20), 48 << 20))

    def build(single_buffer_const):
        const_kwargs = (
            {"pipeline_mode": pl.Buffered(1)} if single_buffer_const else {}
        )
        if use_k_split:
            grid = (Mp // tm, kt)
            in_specs = [
                pl.BlockSpec((tm, tk), lambda i, k: (i, k)),
                pl.BlockSpec((tk, Np), lambda i, k: (k, 0)),
                pl.BlockSpec((1, Np), lambda i, k: (0, 0), **const_kwargs),
            ]
            out_specs = pl.BlockSpec((tm, Np), lambda i, k: (i, 0))
            kernel = _kernel_ksplit
            scratch = [pltpu.VMEM((tm, Np), jnp.float32)]
            dims = ("parallel", "arbitrary")
        else:
            grid = (Mp // tm,)
            in_specs = [
                pl.BlockSpec((tm, Kp), lambda i: (i, 0)),
                pl.BlockSpec((Kp, Np), lambda i: (0, 0), **const_kwargs),
                pl.BlockSpec((1, Np), lambda i: (0, 0), **const_kwargs),
            ]
            out_specs = pl.BlockSpec((tm, Np), lambda i: (i, 0))
            kernel = _kernel_resident
            scratch = []
            dims = ("parallel",)
        return pl.pallas_call(
            kernel,
            out_shape=jax.ShapeDtypeStruct((Mp, Np), out_dtype),
            grid_spec=pltpu.PrefetchScalarGridSpec(
                num_scalar_prefetch=0,
                grid=grid,
                in_specs=in_specs,
                out_specs=out_specs,
                scratch_shapes=scratch,
            ),
            compiler_params=pltpu.CompilerParams(
                dimension_semantics=dims,
                vmem_limit_bytes=vmem_limit,
            ),
        )

    try:
        out = build(True)(x_p, w_p, b_p)
    except Exception:
        # Fallback: default double-buffering for the constant-index operands.
        out = build(False)(x_p, w_p, b_p)

    out = out[:M, :output_dim]
    return out.reshape(*lead_shape, output_dim)


def reference(features, weight, bias):
    y = jnp.einsum("...i,oi->...o", features, weight) + bias
    n = jnp.sqrt(jnp.sum(y * y, axis=-1, keepdims=True))
    y = y / jnp.maximum(n, 1e-12)
    return jnp.tanh(y)


if __name__ == "__main__":
    key = jax.random.PRNGKey(0)
    k_x, k_w, k_b, k_x2, k_w2, k_b2 = jax.random.split(key, 6)

    # --- Test 1: resident-weight path (batch=2, seq=8, hidden=32) ---
    input_dim, output_dim = 32, 32
    features = jax.random.normal(k_x, (2, 8, input_dim), dtype=jnp.float32)
    bound = 1.0 / (input_dim ** 0.5)
    weight = jax.random.uniform(k_w, (output_dim, input_dim),
                                minval=-bound, maxval=bound, dtype=jnp.float32)
    bias = jax.random.uniform(k_b, (output_dim,),
                              minval=-bound, maxval=bound, dtype=jnp.float32)

    out = jax.block_until_ready(mlp_layer(features, weight, bias))
    ref = reference(features, weight, bias)
    assert out.shape == (2, 8, output_dim)
    assert jnp.allclose(out, ref, atol=1e-5, rtol=1e-5)

    # --- Test 2: K-split accumulator path (forced, 3 K steps) ---
    input_dim2, output_dim2 = 320, 64
    features2 = jax.random.normal(k_x2, (2, 4, input_dim2), dtype=jnp.float32)
    bound2 = 1.0 / (input_dim2 ** 0.5)
    weight2 = jax.random.uniform(k_w2, (output_dim2, input_dim2),
                                 minval=-bound2, maxval=bound2,
                                 dtype=jnp.float32)
    bias2 = jax.random.uniform(k_b2, (output_dim2,),
                               minval=-bound2, maxval=bound2,
                               dtype=jnp.float32)

    out2 = jax.block_until_ready(
        mlp_layer(features2, weight2, bias2, tk=128, force_k_split=True))
    ref2 = reference(features2, weight2, bias2)
    assert out2.shape == (2, 4, output_dim2)
    assert jnp.allclose(out2, ref2, atol=1e-5, rtol=1e-5)

    print("KERNEL_OK")
</pallas_src>

<mosaic_0001>
module attributes {stable_mosaic.version = 11 : i64} {
  func.func @_kernel_resident(%arg0: i32, %arg1: memref<16x128xf32, #tpu.memory_space<vmem>>, %arg2: memref<128x128xf32, #tpu.memory_space<vmem>>, %arg3: memref<1x128xf32, #tpu.memory_space<vmem>>, %arg4: memref<16x128xf32, #tpu.memory_space<vmem>>) attributes {dimension_semantics = [#tpu.dimension_semantics<parallel>], iteration_bounds = array<i64: 1>, scalar_prefetch = 0 : i64, scratch_operands = 0 : i64, tpu.core_type = #tpu.core_type<tc>, window_params = [{transform_indices = @transform_0, window_bounds = array<i64: 16, 128>}, {pipeline_mode = #tpu.pipeline_mode<synchronous>, transform_indices = @transform_1, window_bounds = array<i64: 128, 128>}, {pipeline_mode = #tpu.pipeline_mode<synchronous>, transform_indices = @transform_2, window_bounds = array<i64: 1, 128>}, {transform_indices = @transform_3, window_bounds = array<i64: 16, 128>}]} {
    %c0 = arith.constant 0 : index
    %c0_0 = arith.constant 0 : index
    %0 = vector.load %arg1[%c0, %c0_0] : memref<16x128xf32, #tpu.memory_space<vmem>>, vector<16x128xf32>
    %c0_1 = arith.constant 0 : index
    %c0_2 = arith.constant 0 : index
    %1 = vector.load %arg2[%c0_1, %c0_2] : memref<128x128xf32, #tpu.memory_space<vmem>>, vector<128x128xf32>
    %cst = arith.constant dense<0.000000e+00> : vector<16x128xf32>
    %2 = tpu.matmul %0, %1, %cst {dimension_numbers = #tpu.dot_dimension_numbers<[1], [0], [0], [1], [0, 0, 1, 1], [], []>} : vector<16x128xf32>, vector<128x128xf32>, vector<16x128xf32> -> vector<16x128xf32>
    %c0_3 = arith.constant 0 : index
    %c0_4 = arith.constant 0 : index
    %3 = vector.load %arg3[%c0_3, %c0_4] : memref<1x128xf32, #tpu.memory_space<vmem>>, vector<1x128xf32>
    %4 = vector.broadcast %3 : vector<1x128xf32> to vector<16x128xf32>
    %5 = arith.addf %2, %4 : vector<16x128xf32>
    %6 = arith.mulf %5, %5 : vector<16x128xf32>
    %cst_5 = arith.constant dense<0.000000e+00> : vector<16xf32>
    %7 = vector.multi_reduction <add>, %6, %cst_5 [1] : vector<16x128xf32> to vector<16xf32>
    %8 = vector.shape_cast %7 : vector<16xf32> to vector<16x1xf32>
    %cst_6 = arith.constant 1.000000e-24 : f32
    %9 = vector.broadcast %cst_6 : f32 to vector<16x1xf32>
    %10 = arith.maximumf %8, %9 : vector<16x1xf32>
    %11 = math.rsqrt %10 : vector<16x1xf32>
    %12 = vector.broadcast %11 : vector<16x1xf32> to vector<16x128xf32>
    %13 = arith.mulf %5, %12 : vector<16x128xf32>
    %14 = math.tanh %13 : vector<16x128xf32>
    %c0_7 = arith.constant 0 : index
    %c0_8 = arith.constant 0 : index
    %15 = vector.load %arg4[%c0_7, %c0_8] : memref<16x128xf32, #tpu.memory_space<vmem>>, vector<16x128xf32>
    tpu.vector_store %arg4[%c0_7, %c0_8], %14 {strides = array<i32>} : memref<16x128xf32, #tpu.memory_space<vmem>>, vector<16x128xf32>,
    return
  }
  func.func @transform_0(%arg0: i32) -> (i32, i32) {
    %c0_i32 = arith.constant 0 : i32
    %c0_i32_0 = arith.constant 0 : i32
    return %arg0, %c0_i32 : i32, i32
  }
  func.func @transform_1(%arg0: i32) -> (i32, i32) {
    %c0_i32 = arith.constant 0 : i32
    %c0_i32_0 = arith.constant 0 : i32
    %c0_i32_1 = arith.constant 0 : i32
    return %c0_i32, %c0_i32_0 : i32, i32
  }
  func.func @transform_2(%arg0: i32) -> (i32, i32) {
    %c0_i32 = arith.constant 0 : i32
    %c0_i32_0 = arith.constant 0 : i32
    %c0_i32_1 = arith.constant 0 : i32
    return %c0_i32, %c0_i32_0 : i32, i32
  }
  func.func @transform_3(%arg0: i32) -> (i32, i32) {
    %c0_i32 = arith.constant 0 : i32
    %c0_i32_0 = arith.constant 0 : i32
    return %arg0, %c0_i32 : i32, i32
  }
}

module attributes {stable_mosaic.version = 11 : i64} {
  func.func @_kernel_resident(%arg0: i32, %arg1: memref<16x128xf32, #tpu.memory_space<vmem>>, %arg2: memref<128x128xf32, #tpu.memory_space<vmem>>, %arg3: memref<1x128xf32, #tpu.memory_space<vmem>>, %arg4: memref<16x128xf32, #tpu.memory_space<vmem>>) attributes {dimension_semantics = [#tpu.dimension_semantics<parallel>], iteration_bounds = array<i64: 1>, scalar_prefetch = 0 : i64, scratch_operands = 0 : i64, tpu.core_type = #tpu.core_type<tc>, window_params = [{transform_indices = @transform_0, window_bounds = array<i64: 16, 128>}, {pipeline_mode = #tpu.pipeline_mode<synchronous>, transform_indices = @transform_1, window_bounds = array<i64: 128, 128>}, {pipeline_mode = #tpu.pipeline_mode<synchronous>, transform_indices = @transform_2, window_bounds = array<i64: 1, 128>}, {transform_indices = @transform_3, window_bounds = array<i64: 16, 128>}]} {
    %c0 = arith.constant 0 : index
    %c0_0 = arith.constant 0 : index
    %0 = vector.load %arg1[%c0, %c0_0] : memref<16x128xf32, #tpu.memory_space<vmem>>, vector<16x128xf32>
    %c0_1 = arith.constant 0 : index
    %c0_2 = arith.constant 0 : index
    %1 = vector.load %arg2[%c0_1, %c0_2] : memref<128x128xf32, #tpu.memory_space<vmem>>, vector<128x128xf32>
    %cst = arith.constant dense<0.000000e+00> : vector<16x128xf32>
    %2 = tpu.matmul %0, %1, %cst {dimension_numbers = #tpu.dot_dimension_numbers<[1], [0], [0], [1], [0, 0, 1, 1], [], []>} : vector<16x128xf32>, vector<128x128xf32>, vector<16x128xf32> -> vector<16x128xf32>
    %c0_3 = arith.constant 0 : index
    %c0_4 = arith.constant 0 : index
    %3 = vector.load %arg3[%c0_3, %c0_4] : memref<1x128xf32, #tpu.memory_space<vmem>>, vector<1x128xf32>
    %4 = vector.broadcast %3 : vector<1x128xf32> to vector<16x128xf32>
    %5 = arith.addf %2, %4 : vector<16x128xf32>
    %6 = arith.mulf %5, %5 : vector<16x128xf32>
    %cst_5 = arith.constant dense<0.000000e+00> : vector<16xf32>
    %7 = vector.multi_reduction <add>, %6, %cst_5 [1] : vector<16x128xf32> to vector<16xf32>
    %8 = vector.shape_cast %7 : vector<16xf32> to vector<16x1xf32>
    %cst_6 = arith.constant 1.000000e-24 : f32
    %9 = vector.broadcast %cst_6 : f32 to vector<16x1xf32>
    %10 = arith.maximumf %8, %9 : vector<16x1xf32>
    %11 = math.rsqrt %10 : vector<16x1xf32>
    %12 = vector.broadcast %11 : vector<16x1xf32> to vector<16x128xf32>
    %13 = arith.mulf %5, %12 : vector<16x128xf32>
    %14 = math.tanh %13 : vector<16x128xf32>
    %c0_7 = arith.constant 0 : index
    %c0_8 = arith.constant 0 : index
    %15 = vector.load %arg4[%c0_7, %c0_8] : memref<16x128xf32, #tpu.memory_space<vmem>>, vector<16x128xf32>
    tpu.vector_store %arg4[%c0_7, %c0_8], %14 {strides = array<i32>} : memref<16x128xf32, #tpu.memory_space<vmem>>, vector<16x128xf32>,
    return
  }
  func.func @transform_0(%arg0: i32) -> (i32, i32) {
    %c0_i32 = arith.constant 0 : i32
    %c0_i32_0 = arith.constant 0 : i32
    return %arg0, %c0_i32 : i32, i32
  }
  func.func @transform_1(%arg0: i32) -> (i32, i32) {
    %c0_i32 = arith.constant 0 : i32
    %c0_i32_0 = arith.constant 0 : i32
    %c0_i32_1 = arith.constant 0 : i32
    return %c0_i32, %c0_i32_0 : i32, i32
  }
  func.func @transform_2(%arg0: i32) -> (i32, i32) {
    %c0_i32 = arith.constant 0 : i32
    %c0_i32_0 = arith.constant 0 : i32
    %c0_i32_1 = arith.constant 0 : i32
    return %c0_i32, %c0_i32_0 : i32, i32
  }
  func.func @transform_3(%arg0: i32) -> (i32, i32) {
    %c0_i32 = arith.constant 0 : i32
    %c0_i32_0 = arith.constant 0 : i32
    return %arg0, %c0_i32 : i32, i32
  }
}

</mosaic_0001>

<bundles_post_ra>
// kernel: tpu_custom_call.1
= control target key start
LH: loop header
LB: loop body
LE: loop exit
PB: predicated region body
PF: predicated region fallthrough
CT: control target
= control target key end

     0   :  { %8 = vsyncpa [#allocation3], 0  ;;  %s356_s0 = inlined_call_operand.hbm [shape: f32[16,128], index: 0, kind: input, shape index: {}]   ;;  %s357_s1 = inlined_call_operand.hbm [shape: f32[128,128], index: 1, kind: input, shape index: {}]   ;;  %s358_s2 = inlined_call_operand.vmem [shape: f32[1,128], index: 2, kind: input, shape index: {}]   ;;  %s359_s3 = inlined_call_operand.hbm [shape: f32[16,128], index: 3, kind: output, shape index: {}]  }
   0x1   :  { %9 = vsyncpa [#allocation6], 0 }
   0x2   :  { %10 = vsyncpa [#allocation4], 0  ;;  %s310_s12 = smov [#allocation2]  }
   0x3   :  { %s16_s13 = sshll.u32 %s310_s12, 4  ;;  %s17_s13 = int_to_ptr.vmem [resolvable:$true] %s16_s13 }
   0x4   :  { %s252_s14 = scalar_lea.vmem %s17_s13, 256  ;;  %p257_p1 = scmp.lt.s32.totalorder %s17_s13, %s17_s13 }
   0x5   :  { %p253_p0 = scmp.ne.s32.totalorder %s17_s13, %s252_s14  ;;  %p258_p2 = scmp.lt.s32.totalorder %s252_s14, %s252_s14 }
   0x7   :  { %p259_p3 = por %p258_p2, %p257_p1 }
   0x9   :  { %p260_p4 = pnand %p259_p3, %p253_p0 }
   0xb   :  { %263 = shalt.err (!%p260_p4)
}
   0xc   :  { %s311_s15 = smov 128   ;;  %s312_s16 = smov 8  }
   0xd   :  { %22 = dma.hbm_to_vmem [thread:$0]  %s356_s0, 256, %s17_s13, [#allocation3], %s311_s15, %s311_s15, %s312_s16  }
   0xe   :  { %s313_s19 = smov [#allocation5]  }
   0xf   :  { %s28_s20 = sshll.u32 %s313_s19, 4  ;;  %s29_s20 = int_to_ptr.vmem [resolvable:$true] %s28_s20 }
  0x10   :  { %s272_s21 = scalar_lea.vmem %s29_s20, 2048  ;;  %p277_p6 = scmp.lt.s32.totalorder %s29_s20, %s29_s20 }
  0x11   :  { %p273_p5 = scmp.ne.s32.totalorder %s29_s20, %s272_s21  ;;  %p278_p7 = scmp.lt.s32.totalorder %s272_s21, %s272_s21 }
  0x13   :  { %p279_p8 = por %p278_p7, %p277_p6 }
  0x15   :  { %p280_p9 = pnand %p279_p8, %p273_p5 }
  0x17   :  { %283 = shalt.err (!%p280_p9)
}
  0x18   :  { %34 = dma.hbm_to_vmem [thread:$0]  %s357_s1, 2048, %s29_s20, [#allocation6], %s311_s15, %s311_s15, %s312_s16  }
  0x19   :  { %304 = dma.done.wait [#allocation3], 256  }
  0x1a   :  { %305 = vsyncadd [#allocation3], 4294967040 }
  0x1b   :  { %306 = dma.done.wait [#allocation6], 2048  }
  0x1c   :  { %307 = vsyncadd [#allocation6], 4294965248  ;;  %v60_v0 = vld [vmem:[#allocation5 + $0x78] sm:$0xff]  ;;  %v59_v1 = vld [vmem:[#allocation5 + $0x70] sm:$0xff] }
  0x1d   :  { %196 = vmatprep.subr.mxu0 %v60_v0  ;;  %v58_v2 = vld [vmem:[#allocation5 + $0x68] sm:$0xff]  ;;  %v57_v3 = vld [vmem:[#allocation5 + $0x60] sm:$0xff]  ;;  %v43_v4 = vld [vmem:[#allocation2] sm:$0xff] }
  0x1e   :  { %197 = vmatpush3.msra.mxu0 %v60_v0  ;;  %v56_v5 = vld [vmem:[#allocation5 + $0x58] sm:$0xff]  ;;  %228 = vmatprep.mubr.f32.mxu0 %v43_v4  ;;  %v55_v6 = vld [vmem:[#allocation5 + $0x50] sm:$0xff]  ;;  %v54_v7 = vld [vmem:[#allocation5 + $0x48] sm:$0xff] }
  0x1f   :  { %198 = vmatprep.subr.mxu0 %v59_v1  ;;  %v53_v8 = vld [vmem:[#allocation5 + $0x40] sm:$0xff]  ;;  %v52_v9 = vld [vmem:[#allocation5 + $0x38] sm:$0xff]  ;;  %v51_v10 = vld [vmem:[#allocation5 + $0x30] sm:$0xff] }
  0x20   :  { %199 = vmatpush3.msra.mxu0 %v59_v1  ;;  %v50_v11 = vld [vmem:[#allocation5 + $0x28] sm:$0xff]  ;;  %v49_v12 = vld [vmem:[#allocation5 + $0x20] sm:$0xff]  ;;  %v48_v13 = vld [vmem:[#allocation5 + $0x18] sm:$0xff] }
  0x21   :  { %200 = vmatprep.subr.mxu0 %v58_v2  ;;  %v47_v14 = vld [vmem:[#allocation5 + $0x10] sm:$0xff]  ;;  %v46_v15 = vld [vmem:[#allocation5 + $0x8] sm:$0xff]  ;;  %v45_v16 = vld [vmem:[#allocation5] sm:$0xff] }
  0x22   :  { %201 = vmatpush3.msra.mxu0 %v58_v2  ;;  %v44_v17 = vld [vmem:[#allocation2 + $0x8] sm:$0xff]  ;;  %v177_v19 = vld [vmem:[%s358_s2] ss:$0 sm:$0xff]  ;;  %s314_s2 = smov [#allocation7]  }
  0x23   :  { %202 = vmatprep.subr.mxu0 %v57_v3  ;;  %s164_s24 = sshll.u32 %s314_s2, 4  ;;  %s165_s24 = int_to_ptr.vmem [resolvable:$true] %s164_s24 }
  0x24   :  { %203 = vmatpush3.msra.mxu0 %v57_v3  ;;  %s284_s25 = scalar_lea.vmem %s165_s24, 256  ;;  %p289_p11 = scmp.lt.s32.totalorder %s165_s24, %s165_s24 }
  0x25   :  { %204 = vmatprep.subr.mxu0 %v56_v5  ;;  %p285_p10 = scmp.ne.s32.totalorder %s165_s24, %s284_s25  ;;  %p290_p12 = scmp.lt.s32.totalorder %s284_s25, %s284_s25 }
  0x26   :  { %205 = vmatpush3.msra.mxu0 %v56_v5 }
  0x27   :  { %206 = vmatprep.subr.mxu0 %v55_v6  ;;  %p291_p13 = por %p290_p12, %p289_p11 }
  0x28   :  { %207 = vmatpush3.msra.mxu0 %v55_v6 }
  0x29   :  { %208 = vmatprep.subr.mxu0 %v54_v7  ;;  %p292_p0 = pnand %p291_p13, %p285_p10 }
  0x2a   :  { %209 = vmatpush3.msra.mxu0 %v54_v7 }
  0x2b   :  { %210 = vmatprep.subr.mxu0 %v53_v8 }
  0x2c   :  { %211 = vmatpush3.msra.mxu0 %v53_v8 }
  0x2d   :  { %212 = vmatprep.subr.mxu0 %v52_v9 }
  0x2e   :  { %213 = vmatpush3.msra.mxu0 %v52_v9 }
  0x2f   :  { %214 = vmatprep.subr.mxu0 %v51_v10 }
  0x30   :  { %215 = vmatpush3.msra.mxu0 %v51_v10 }
  0x31   :  { %216 = vmatprep.subr.mxu0 %v50_v11 }
  0x32   :  { %217 = vmatpush3.msra.mxu0 %v50_v11 }
  0x33   :  { %218 = vmatprep.subr.mxu0 %v49_v12 }
  0x34   :  { %219 = vmatpush3.msra.mxu0 %v49_v12 }
  0x35   :  { %220 = vmatprep.subr.mxu0 %v48_v13 }
  0x36   :  { %221 = vmatpush3.msra.mxu0 %v48_v13 }
  0x37   :  { %222 = vmatprep.subr.mxu0 %v47_v14 }
  0x38   :  { %223 = vmatpush3.msra.mxu0 %v47_v14 }
  0x39   :  { %224 = vmatprep.subr.mxu0 %v46_v15 }
  0x3a   :  { %225 = vmatpush3.msra.mxu0 %v46_v15 }
  0x3b   :  { %226 = vmatprep.subr.mxu0 %v45_v16 }
  0x3c   :  { %227 = vmatpush3.msra.mxu0 %v45_v16 }
  0x3d   :  { %229 = vmatmul.mubr.f32.vlgmr.msra.gmra.mxu0 %v44_v17 }
  0xfd   :  { %v230_v18 = vpop.f32.mrf.mxu0 }
  0xfe   :  { %v140_v22 = vadd.f32 %v230_v18, %v177_v19 }
  0xff   :  { %v134_v20 = vpop.f32.mrf.mxu0 }
 0x100   :  { %v135_v21 = vadd.f32 %v177_v19, %v134_v20  ;;  %v144_v24 = vmul.f32 %v140_v22, %v140_v22 }
 0x102   :  { %v143_v23 = vmul.f32 %v135_v21, %v135_v21 }
 0x104   :  { %145 = vadd.xlane.f32.xlu0 %v143_v23 }
 0x108   :  { %147 = vadd.xlane.f32.xlu0 %v144_v24 }
 0x18d   :  { %v146_v25 = vpop.xlane.xlu0 %145 }
 0x18e   :  { %v149_v26 = vmax.f32 %v146_v25, 1e-24 }
 0x190   :  { %236 = vrsqrt.f32 %v149_v26 }
 0x191   :  { %v148_v27 = vpop.xlane.xlu0 %147 }
 0x192   :  { %v150_v28 = vmax.f32 %v148_v27, 1e-24 }
 0x194   :  { %238 = vrsqrt.f32 %v150_v28 }
 0x19d   :  { %v237_v29 = vpop.eup %236 }
 0x19e   :  { %v153_v30 = vmul.f32 %v237_v29, %v135_v21 }
 0x1a0   :  { %240 = vtanh.f32 %v153_v30 }
 0x1a1   :  { %v239_v31 = vpop.eup %238 }
 0x1a2   :  { %v154_v32 = vmul.f32 %v239_v31, %v140_v22 }
 0x1a4   :  { %242 = vtanh.f32 %v154_v32 }
 0x1ad   :  { %v241_v33 = vpop.eup %240 }
 0x1ae   :  { %157 = vst [vmem:[#allocation7] sm:$0xff] %v241_v33 }
 0x1b1   :  { %v243_v34 = vpop.eup %242 }
 0x1b2   :  { %158 = vst [vmem:[#allocation7 + $0x8] sm:$0xff] %v243_v34 }
 0x1b3   :  { %295 = shalt.err (!%p292_p0)
}
 0x1b4   :  { %170 = dma.vmem_to_hbm [thread:$0]  %s165_s24, 256, %s359_s3, [#allocation4], %s311_s15, %s311_s15, %s312_s16  }
 0x1b5   :  { %308 = dma.done.wait [#allocation4], 256  }
 0x1b6   :  { %309 = vsyncadd [#allocation4], 4294967040 }
 0x1b7   :  { %174 = vsyncpa [#allocation3], 1 }
 0x1b8   :  { %175 = vsyncpa [#allocation6], 1 }
 0x1b9   :  { %176 = vsyncpa [#allocation4], 1 }

// kernel: tpu_custom_call.1
= control target key start
LH: loop header
LB: loop body
LE: loop exit
PB: predicated region body
PF: predicated region fallthrough
CT: control target
= control target key end

     0   :  { %8 = vsyncpa [#allocation3], 0  ;;  %s356_s0 = inlined_call_operand.hbm [shape: f32[16,128], index: 0, kind: input, shape index: {}]   ;;  %s357_s1 = inlined_call_operand.hbm [shape: f32[128,128], index: 1, kind: input, shape index: {}]   ;;  %s358_s2 = inlined_call_operand.vmem [shape: f32[1,128], index: 2, kind: input, shape index: {}]   ;;  %s359_s3 = inlined_call_operand.hbm [shape: f32[16,128], index: 3, kind: output, shape index: {}]  }
   0x1   :  { %9 = vsyncpa [#allocation6], 0 }
   0x2   :  { %10 = vsyncpa [#allocation4], 0  ;;  %s310_s12 = smov [#allocation2]  }
   0x3   :  { %s16_s13 = sshll.u32 %s310_s12, 4  ;;  %s17_s13 = int_to_ptr.vmem [resolvable:$true] %s16_s13 }
   0x4   :  { %s252_s14 = scalar_lea.vmem %s17_s13, 256  ;;  %p257_p1 = scmp.lt.s32.totalorder %s17_s13, %s17_s13 }
   0x5   :  { %p253_p0 = scmp.ne.s32.totalorder %s17_s13, %s252_s14  ;;  %p258_p2 = scmp.lt.s32.totalorder %s252_s14, %s252_s14 }
   0x7   :  { %p259_p3 = por %p258_p2, %p257_p1 }
   0x9   :  { %p260_p4 = pnand %p259_p3, %p253_p0 }
   0xb   :  { %263 = shalt.err (!%p260_p4)
}
   0xc   :  { %s311_s15 = smov 128   ;;  %s312_s16 = smov 8  }
   0xd   :  { %22 = dma.hbm_to_vmem [thread:$0]  %s356_s0, 256, %s17_s13, [#allocation3], %s311_s15, %s311_s15, %s312_s16  }
   0xe   :  { %s313_s19 = smov [#allocation5]  }
   0xf   :  { %s28_s20 = sshll.u32 %s313_s19, 4  ;;  %s29_s20 = int_to_ptr.vmem [resolvable:$true] %s28_s20 }
  0x10   :  { %s272_s21 = scalar_lea.vmem %s29_s20, 2048  ;;  %p277_p6 = scmp.lt.s32.totalorder %s29_s20, %s29_s20 }
  0x11   :  { %p273_p5 = scmp.ne.s32.totalorder %s29_s20, %s272_s21  ;;  %p278_p7 = scmp.lt.s32.totalorder %s272_s21, %s272_s21 }
  0x13   :  { %p279_p8 = por %p278_p7, %p277_p6 }
  0x15   :  { %p280_p9 = pnand %p279_p8, %p273_p5 }
  0x17   :  { %283 = shalt.err (!%p280_p9)
}
  0x18   :  { %34 = dma.hbm_to_vmem [thread:$0]  %s357_s1, 2048, %s29_s20, [#allocation6], %s311_s15, %s311_s15, %s312_s16  }
  0x19   :  { %304 = dma.done.wait [#allocation3], 256  }
  0x1a   :  { %305 = vsyncadd [#allocation3], 4294967040 }
  0x1b   :  { %306 = dma.done.wait [#allocation6], 2048  }
  0x1c   :  { %307 = vsyncadd [#allocation6], 4294965248  ;;  %v60_v0 = vld [vmem:[#allocation5 + $0x78] sm:$0xff]  ;;  %v59_v1 = vld [vmem:[#allocation5 + $0x70] sm:$0xff] }
  0x1d   :  { %196 = vmatprep.subr.mxu0 %v60_v0  ;;  %v58_v2 = vld [vmem:[#allocation5 + $0x68] sm:$0xff]  ;;  %v57_v3 = vld [vmem:[#allocation5 + $0x60] sm:$0xff]  ;;  %v43_v4 = vld [vmem:[#allocation2] sm:$0xff] }
  0x1e   :  { %197 = vmatpush3.msra.mxu0 %v60_v0  ;;  %v56_v5 = vld [vmem:[#allocation5 + $0x58] sm:$0xff]  ;;  %228 = vmatprep.mubr.f32.mxu0 %v43_v4  ;;  %v55_v6 = vld [vmem:[#allocation5 + $0x50] sm:$0xff]  ;;  %v54_v7 = vld [vmem:[#allocation5 + $0x48] sm:$0xff] }
  0x1f   :  { %198 = vmatprep.subr.mxu0 %v59_v1  ;;  %v53_v8 = vld [vmem:[#allocation5 + $0x40] sm:$0xff]  ;;  %v52_v9 = vld [vmem:[#allocation5 + $0x38] sm:$0xff]  ;;  %v51_v10 = vld [vmem:[#allocation5 + $0x30] sm:$0xff] }
  0x20   :  { %199 = vmatpush3.msra.mxu0 %v59_v1  ;;  %v50_v11 = vld [vmem:[#allocation5 + $0x28] sm:$0xff]  ;;  %v49_v12 = vld [vmem:[#allocation5 + $0x20] sm:$0xff]  ;;  %v48_v13 = vld [vmem:[#allocation5 + $0x18] sm:$0xff] }
  0x21   :  { %200 = vmatprep.subr.mxu0 %v58_v2  ;;  %v47_v14 = vld [vmem:[#allocation5 + $0x10] sm:$0xff]  ;;  %v46_v15 = vld [vmem:[#allocation5 + $0x8] sm:$0xff]  ;;  %v45_v16 = vld [vmem:[#allocation5] sm:$0xff] }
  0x22   :  { %201 = vmatpush3.msra.mxu0 %v58_v2  ;;  %v44_v17 = vld [vmem:[#allocation2 + $0x8] sm:$0xff]  ;;  %v177_v19 = vld [vmem:[%s358_s2] ss:$0 sm:$0xff]  ;;  %s314_s2 = smov [#allocation7]  }
  0x23   :  { %202 = vmatprep.subr.mxu0 %v57_v3  ;;  %s164_s24 = sshll.u32 %s314_s2, 4  ;;  %s165_s24 = int_to_ptr.vmem [resolvable:$true] %s164_s24 }
  0x24   :  { %203 = vmatpush3.msra.mxu0 %v57_v3  ;;  %s284_s25 = scalar_lea.vmem %s165_s24, 256  ;;  %p289_p11 = scmp.lt.s32.totalorder %s165_s24, %s165_s24 }
  0x25   :  { %204 = vmatprep.subr.mxu0 %v56_v5  ;;  %p285_p10 = scmp.ne.s32.totalorder %s165_s24, %s284_s25  ;;  %p290_p12 = scmp.lt.s32.totalorder %s284_s25, %s284_s25 }
  0x26   :  { %205 = vmatpush3.msra.mxu0 %v56_v5 }
  0x27   :  { %206 = vmatprep.subr.mxu0 %v55_v6  ;;  %p291_p13 = por %p290_p12, %p289_p11 }
  0x28   :  { %207 = vmatpush3.msra.mxu0 %v55_v6 }
  0x29   :  { %208 = vmatprep.subr.mxu0 %v54_v7  ;;  %p292_p0 = pnand %p291_p13, %p285_p10 }
  0x2a   :  { %209 = vmatpush3.msra.mxu0 %v54_v7 }
  0x2b   :  { %210 = vmatprep.subr.mxu0 %v53_v8 }
  0x2c   :  { %211 = vmatpush3.msra.mxu0 %v53_v8 }
  0x2d   :  { %212 = vmatprep.subr.mxu0 %v52_v9 }
  0x2e   :  { %213 = vmatpush3.msra.mxu0 %v52_v9 }
  0x2f   :  { %214 = vmatprep.subr.mxu0 %v51_v10 }
  0x30   :  { %215 = vmatpush3.msra.mxu0 %v51_v10 }
  0x31   :  { %216 = vmatprep.subr.mxu0 %v50_v11 }
  0x32   :  { %217 = vmatpush3.msra.mxu0 %v50_v11 }
  0x33   :  { %218 = vmatprep.subr.mxu0 %v49_v12 }
  0x34   :  { %219 = vmatpush3.msra.mxu0 %v49_v12 }
  0x35   :  { %220 = vmatprep.subr.mxu0 %v48_v13 }
  0x36   :  { %221 = vmatpush3.msra.mxu0 %v48_v13 }
  0x37   :  { %222 = vmatprep.subr.mxu0 %v47_v14 }
  0x38   :  { %223 = vmatpush3.msra.mxu0 %v47_v14 }
  0x39   :  { %224 = vmatprep.subr.mxu0 %v46_v15 }
  0x3a   :  { %225 = vmatpush3.msra.mxu0 %v46_v15 }
  0x3b   :  { %226 = vmatprep.subr.mxu0 %v45_v16 }
  0x3c   :  { %227 = vmatpush3.msra.mxu0 %v45_v16 }
  0x3d   :  { %229 = vmatmul.mubr.f32.vlgmr.msra.gmra.mxu0 %v44_v17 }
  0xfd   :  { %v230_v18 = vpop.f32.mrf.mxu0 }
  0xfe   :  { %v140_v22 = vadd.f32 %v230_v18, %v177_v19 }
  0xff   :  { %v134_v20 = vpop.f32.mrf.mxu0 }
 0x100   :  { %v135_v21 = vadd.f32 %v177_v19, %v134_v20  ;;  %v144_v24 = vmul.f32 %v140_v22, %v140_v22 }
 0x102   :  { %v143_v23 = vmul.f32 %v135_v21, %v135_v21 }
 0x104   :  { %145 = vadd.xlane.f32.xlu0 %v143_v23 }
 0x108   :  { %147 = vadd.xlane.f32.xlu0 %v144_v24 }
 0x18d   :  { %v146_v25 = vpop.xlane.xlu0 %145 }
 0x18e   :  { %v149_v26 = vmax.f32 %v146_v25, 1e-24 }
 0x190   :  { %236 = vrsqrt.f32 %v149_v26 }
 0x191   :  { %v148_v27 = vpop.xlane.xlu0 %147 }
 0x192   :  { %v150_v28 = vmax.f32 %v148_v27, 1e-24 }
 0x194   :  { %238 = vrsqrt.f32 %v150_v28 }
 0x19d   :  { %v237_v29 = vpop.eup %236 }
 0x19e   :  { %v153_v30 = vmul.f32 %v237_v29, %v135_v21 }
 0x1a0   :  { %240 = vtanh.f32 %v153_v30 }
 0x1a1   :  { %v239_v31 = vpop.eup %238 }
 0x1a2   :  { %v154_v32 = vmul.f32 %v239_v31, %v140_v22 }
 0x1a4   :  { %242 = vtanh.f32 %v154_v32 }
 0x1ad   :  { %v241_v33 = vpop.eup %240 }
 0x1ae   :  { %157 = vst [vmem:[#allocation7] sm:$0xff] %v241_v33 }
 0x1b1   :  { %v243_v34 = vpop.eup %242 }
 0x1b2   :  { %158 = vst [vmem:[#allocation7 + $0x8] sm:$0xff] %v243_v34 }
 0x1b3   :  { %295 = shalt.err (!%p292_p0)
}
 0x1b4   :  { %170 = dma.vmem_to_hbm [thread:$0]  %s165_s24, 256, %s359_s3, [#allocation4], %s311_s15, %s311_s15, %s312_s16  }
 0x1b5   :  { %308 = dma.done.wait [#allocation4], 256  }
 0x1b6   :  { %309 = vsyncadd [#allocation4], 4294967040 }
 0x1b7   :  { %174 = vsyncpa [#allocation3], 1 }
 0x1b8   :  { %175 = vsyncpa [#allocation6], 1 }
 0x1b9   :  { %176 = vsyncpa [#allocation4], 1 }

</bundles_post_ra>
